<compile_context>
chip_gen: v7x
topology: tpu7x:2x2x1
jax: 0.10.0
libtpu: 0.0.40
codegen_flags: <defaults>
</compile_context>

<pallas_src>
import math

import jax
import jax.numpy as jnp
from jax.experimental import pallas as pl
from jax.experimental.pallas import tpu as pltpu


def projector_cell_kernel(fea_ref, w_ref, s_ref, t3t_ref, o_ref):
    """One (HW-tile, batch) grid step, channel-major (HW on the lane axis).

    fea_ref : (bs,  C, T)  bf16  fea_t, channel-major (shared across the inner b axis)
    w_ref   : (bs,  T)     f32   per-source-batch mask weights for output batch b
    s_ref   : (L,   C)     bf16  token_s @ ((W1^T W2) / sqrt(C))^T  (folded linear1/2 + scale)
    t3t_ref : (Cout,L)     bf16  linear3(token_s)^T
    o_ref   : (Cout,T)           attention cell + residual
    """
    b = pl.program_id(1)
    bs_blk, c_in, t_lanes = fea_ref.shape

    # Batch mixing fused in-kernel (VPU): x[c, t] = sum_p w[p, t] * fea[p, c, t].
    # Unrolled over the tiny bs axis to avoid a (bs, C, T) f32 temporary.
    wv = w_ref[...].astype(jnp.float32)                                  # (bs, T)
    x = jnp.zeros((c_in, t_lanes), jnp.float32)
    for p in range(bs_blk):
        x = x + fea_ref[p].astype(jnp.float32) * wv[p:p + 1]             # (C, T)

    # a^T = s @ x ; the 1/sqrt(C) softmax scale is already folded into s.
    # Structurally-zero x columns stay exactly zero (also in bf16), preserving the
    # torch nonzero()/sparse->dense zero pattern below.
    a_t = jnp.dot(s_ref[...], x.astype(jnp.bfloat16),
                  preferred_element_type=jnp.float32)                    # (L, T)

    # Softmax over L (sublane axis), per-lane — padded/ragged lanes cannot leak.
    m = jnp.max(a_t, axis=0, keepdims=True)
    e = jnp.exp(a_t - m)
    denom = jnp.sum(e, axis=0, keepdims=True)
    prob = e * pl.reciprocal(denom, approx=True)                         # EUP slot
    prob = jnp.where(a_t != 0.0, prob, 0.0)                              # torch sparse trick

    cell = jnp.dot(t3t_ref[...], prob.astype(jnp.bfloat16),
                   preferred_element_type=jnp.float32)                   # (Cout, T)

    # Residual fea_t[b] comes from the fea block already resident in VMEM
    # (in_channels == out_channels for this module).
    res = fea_ref[b].astype(jnp.float32)                                 # (C, T)
    o_ref[...] = (cell + res).astype(o_ref.dtype)


def _device_vmem_params():
    """(per-tile VMEM budget, scoped vmem_limit_bytes) per TPU generation."""
    try:
        kind = jax.devices()[0].device_kind.lower()
    except Exception:
        kind = ""
    if "v7" in kind:
        return 10 << 20, 32 << 20      # 64 MiB physical VMEM -> keep a wide margin
    return 16 << 20, 64 << 20          # v5e / v6e: 128 MiB physical VMEM


def _choose_tile_hw(hw, per_col_bytes, budget, max_lanes=2048):
    """Largest lane-aligned HW tile within the VMEM budget, clamped to max_lanes."""
    cap = min(max(budget // max(per_col_bytes, 1), 128), max_lanes)
    if hw <= cap:
        return hw                      # one lane-dense block (also covers hw % 128 != 0)
    return max((cap // 128) * 128, 128)  # 128-aligned; grid uses cdiv for the ragged tail


def forward_cell_pallas(fea_cm, w_src, s_b, t3t_b, out_dtype):
    """fea_cm: (bs, C, HW) bf16; w_src: (bs, bs, HW) f32; s_b: (bs, L, C); t3t_b: (bs, Cout, L)."""
    bs, c_in, hw = fea_cm.shape
    seq_l = s_b.shape[1]
    c_out = t3t_b.shape[1]
    out_isz = jnp.dtype(out_dtype).itemsize

    budget, vmem_limit = _device_vmem_params()
    # Per-lane-column bytes: double-buffered streams + f32 in-kernel temporaries
    # (x, residual, a_t, e, prob, cell) — the review's missing-temp accounting fix.
    per_col = (2 * fea_cm.dtype.itemsize * bs * c_in        # fea block  x 2 buffers
               + 2 * w_src.dtype.itemsize * bs              # w_src block x 2 buffers
               + 2 * out_isz * c_out                        # out block  x 2 buffers
               + 4 * (2 * c_in + 3 * seq_l + 2 * c_out))    # f32 temporaries
    tile_hw = _choose_tile_hw(hw, per_col, budget)
    n_hw = pl.cdiv(hw, tile_hw)

    cost = pl.CostEstimate(
        flops=int(bs * hw * (2 * bs * c_in + 2 * seq_l * c_in + 2 * c_out * seq_l + c_out)),
        transcendentals=int(bs * hw * (seq_l + 1)),
        bytes_accessed=int(bs * c_in * hw * fea_cm.dtype.itemsize
                           + bs * bs * hw * w_src.dtype.itemsize
                           + bs * c_out * hw * out_isz
                           + s_b.size * s_b.dtype.itemsize
                           + t3t_b.size * t3t_b.dtype.itemsize),
    )

    return pl.pallas_call(
        projector_cell_kernel,
        out_shape=jax.ShapeDtypeStruct((bs, c_out, hw), out_dtype),
        grid=(n_hw, bs),               # HW tiles leading (megacore balance), bs innermost
        in_specs=[
            # Shared fea block: index depends only on h -> DMA'd once per HW tile.
            pl.BlockSpec((bs, c_in, tile_hw), lambda h, b: (0, 0, h)),
            pl.BlockSpec((None, bs, tile_hw), lambda h, b: (b, 0, h)),
            pl.BlockSpec((None, seq_l, c_in), lambda h, b: (b, 0, 0)),
            pl.BlockSpec((None, c_out, seq_l), lambda h, b: (b, 0, 0)),
        ],
        out_specs=pl.BlockSpec((None, c_out, tile_hw), lambda h, b: (b, 0, h)),
        compiler_params=pltpu.CompilerParams(
            dimension_semantics=("parallel", "parallel"),
            vmem_limit_bytes=vmem_limit,
        ),
        cost_estimate=cost,
    )(fea_cm, w_src, s_b, t3t_b)


def projector_forward(mask_t, fea_t, token_s, params, cls=4, out_dtype=jnp.bfloat16):
    """Mirrors Projector.forward (in_channels == out_channels == channel_num)."""
    w1, w2, w3, b3 = params                           # torch weight convention: (out, in)
    bs, c_ch, h, w = fea_t.shape
    _, _, _, hm, wm = mask_t.shape
    hw = h * w

    # glue: nearest-neighbour mask interpolation (F.interpolate default mode)
    row = (jnp.arange(h) * hm) // h
    col = (jnp.arange(w) * wm) // w
    mask_i = mask_t[:, :, 0][:, :, row, :][:, :, :, col]             # (bs, cls, H, W)

    # torch's repeat/view ordering: slot (b, k) multiplies mask[b, k] with
    # fea_t[(b*cls + k) % bs]; fold it into per-source-batch weights (bs, bs, HW)
    # instead of materializing the cls-tiled tensors in HBM. The weighted sum
    # itself is fused into the kernel (fea_c never touches HBM).
    src = (jnp.arange(bs)[:, None] * cls + jnp.arange(cls)[None, :]) % bs
    sel = jax.nn.one_hot(src, bs, dtype=jnp.float32)                 # (bs, cls, bs)
    w_src = (jnp.einsum('bkhw,bkp->bphw', mask_i.astype(jnp.float32), sel)
             / cls).reshape(bs, bs, hw)                              # (bs, bs, HW) f32

    fea_cm = fea_t.reshape(bs, c_ch, hw).astype(jnp.bfloat16)        # the only big stream

    # Fold linear1 o linear2 and the 1/sqrt(C) scale: a = x @ [(W1^T W2)/sqrt(C)] @ t^T
    m_fold = (w1.T @ w2) * (1.0 / math.sqrt(float(c_ch)))            # (C, Tc)
    s_b = jnp.einsum('blt,ct->blc', token_s, m_fold).astype(jnp.bfloat16)      # (bs, L, C)
    t3t_b = (jnp.einsum('ct,blt->bcl', w3, token_s)
             + b3[None, :, None]).astype(jnp.bfloat16)                         # (bs, Cout, L)

    out_cm = forward_cell_pallas(fea_cm, w_src, s_b, t3t_b, out_dtype)         # (bs, Cout, HW)
    return out_cm.reshape(bs, c_ch, h, w)
    # TODO(synk): self.downsample is defined in __init__ but never used in forward(); omitted.


def _reference_forward(mask_t, fea_t, token_s, params, cls=4):
    """Pure-JAX, torch-faithful (unfused, tiled, f32) reference for a sanity check."""
    w1, w2, w3, b3 = params
    bs, c_ch, h, w = fea_t.shape
    _, _, cm, hm, wm = mask_t.shape
    mask_re = mask_t.reshape(bs * cls, cm, hm, wm)
    row = (jnp.arange(h) * hm) // h
    col = (jnp.arange(w) * wm) // w
    mask_interp = mask_re[:, :, row, :][:, :, :, col]
    mask_rep = jnp.tile(mask_interp, (1, c_ch, 1, 1))
    fea_rep = jnp.tile(fea_t, (cls, 1, 1, 1))
    fea_c = (fea_rep * mask_rep).reshape(bs, cls, c_ch, h, w).mean(axis=1)
    q = fea_c.reshape(bs, c_ch, h * w).transpose(0, 2, 1)
    xq = q @ w1.T
    tq = token_s @ w2.T
    a = jnp.einsum('bqt,bkt->bqk', xq, tq)
    p = jax.nn.softmax(a / math.sqrt(c_ch), axis=-1)
    p = jnp.where(a != 0.0, p, 0.0)
    t3 = token_s @ w3.T + b3
    cell = jnp.einsum('bqk,bkc->bqc', p, t3)
    return cell.transpose(0, 2, 1).reshape(bs, c_ch, h, w) + fea_t


if __name__ == "__main__":
    # Small shapes consistent with the module: in_channels == out_channels == channel_num.
    bs, C, H, W = 2, 8, 16, 16
    Tc, L, cls = 32, 8, 4
    hm = wm = 8

    key = jax.random.PRNGKey(0)
    k1, k2, k3, k4, km, kf, kt = jax.random.split(key, 7)

    # Deterministic xavier-normal-style init (torch weight convention: (out, in)).
    w1 = jax.random.normal(k1, (Tc, C), jnp.float32) * math.sqrt(2.0 / (C + Tc))
    w2 = jax.random.normal(k2, (Tc, Tc), jnp.float32) * math.sqrt(2.0 / (Tc + Tc))
    w3 = jax.random.normal(k3, (C, Tc), jnp.float32) * math.sqrt(2.0 / (Tc + C))
    b3 = jax.random.normal(k4, (C,), jnp.float32) * 0.01
    params = (w1, w2, w3, b3)

    mask_t = jax.random.uniform(km, (bs, cls, 1, hm, wm), jnp.float32)
    fea_t = jax.random.normal(kf, (bs, C, H, W), jnp.float32)
    token_s = jax.random.normal(kt, (bs, L, Tc), jnp.float32)

    out = projector_forward(mask_t, fea_t, token_s, params, cls=cls)
    out = jax.block_until_ready(out)

    ref = _reference_forward(mask_t, fea_t, token_s, params, cls=cls)
    assert out.shape == (bs, C, H, W)
    out_f32 = out.astype(jnp.float32)
    assert bool(jnp.all(jnp.isfinite(out_f32)))
    # bf16 streaming + approx-reciprocal softmax -> slightly looser tolerance than pure f32.
    assert bool(jnp.allclose(out_f32, ref, rtol=5e-2, atol=5e-2)), "mismatch vs JAX reference"

    print("KERNEL_OK")
</pallas_src>

<mosaic_0001>
module attributes {stable_mosaic.version = 11 : i64} {
  func.func @projector_cell_kernel(%arg0: i32, %arg1: i32, %arg2: memref<2x8x256xbf16, #tpu.memory_space<vmem>>, %arg3: memref<1x2x256xf32, #tpu.memory_space<vmem>>, %arg4: memref<1x8x8xbf16, #tpu.memory_space<vmem>>, %arg5: memref<1x8x8xbf16, #tpu.memory_space<vmem>>, %arg6: memref<1x8x256xbf16, #tpu.memory_space<vmem>>) attributes {dimension_semantics = [#tpu.dimension_semantics<parallel>, #tpu.dimension_semantics<parallel>], iteration_bounds = array<i64: 1, 2>, scalar_prefetch = 0 : i64, scratch_operands = 0 : i64, tpu.core_type = #tpu.core_type<tc>, window_params = [{transform_indices = @transform_0, window_bounds = array<i64: 2, 8, 256>}, {transform_indices = @transform_1, window_bounds = array<i64: 1, 2, 256>}, {transform_indices = @transform_2, window_bounds = array<i64: 1, 8, 8>}, {transform_indices = @transform_3, window_bounds = array<i64: 1, 8, 8>}, {transform_indices = @transform_4, window_bounds = array<i64: 1, 8, 256>}]} {
    %c0 = arith.constant 0 : index
    %c0_0 = arith.constant 0 : index
    %c0_1 = arith.constant 0 : index
    %0 = vector.load %arg3[%c0, %c0_0, %c0_1] : memref<1x2x256xf32, #tpu.memory_space<vmem>>, vector<1x2x256xf32>
    %1 = vector.shape_cast %0 : vector<1x2x256xf32> to vector<2x256xf32>
    %cst = arith.constant 0.000000e+00 : f32
    %2 = vector.broadcast %cst : f32 to vector<8x256xf32>
    %c0_2 = arith.constant 0 : index
    %c0_3 = arith.constant 0 : index
    %c0_4 = arith.constant 0 : index
    %3 = vector.load %arg2[%c0_2, %c0_3, %c0_4] : memref<2x8x256xbf16, #tpu.memory_space<vmem>>, vector<1x8x256xbf16>
    %4 = vector.shape_cast %3 : vector<1x8x256xbf16> to vector<8x256xbf16>
    %5 = arith.extf %4 : vector<8x256xbf16> to vector<8x256xf32>
    %6 = vector.extract_strided_slice %1 {offsets = [0, 0], sizes = [1, 256], strides = [1, 1]} : vector<2x256xf32> to vector<1x256xf32>
    %7 = vector.broadcast %6 : vector<1x256xf32> to vector<8x256xf32>
    %8 = arith.mulf %5, %7 : vector<8x256xf32>
    %9 = arith.addf %2, %8 : vector<8x256xf32>
    %c1 = arith.constant 1 : index
    %c0_5 = arith.constant 0 : index
    %c0_6 = arith.constant 0 : index
    %10 = vector.load %arg2[%c1, %c0_5, %c0_6] : memref<2x8x256xbf16, #tpu.memory_space<vmem>>, vector<1x8x256xbf16>
    %11 = vector.shape_cast %10 : vector<1x8x256xbf16> to vector<8x256xbf16>
    %12 = arith.extf %11 : vector<8x256xbf16> to vector<8x256xf32>
    %13 = vector.extract_strided_slice %1 {offsets = [1, 0], sizes = [1, 256], strides = [1, 1]} : vector<2x256xf32> to vector<1x256xf32>
    %14 = vector.broadcast %13 : vector<1x256xf32> to vector<8x256xf32>
    %15 = arith.mulf %12, %14 : vector<8x256xf32>
    %16 = arith.addf %9, %15 : vector<8x256xf32>
    %c0_7 = arith.constant 0 : index
    %c0_8 = arith.constant 0 : index
    %c0_9 = arith.constant 0 : index
    %17 = vector.load %arg4[%c0_7, %c0_8, %c0_9] : memref<1x8x8xbf16, #tpu.memory_space<vmem>>, vector<1x8x8xbf16>
    %18 = vector.shape_cast %17 : vector<1x8x8xbf16> to vector<8x8xbf16>
    %19 = arith.truncf %16 : vector<8x256xf32> to vector<8x256xbf16>
    %cst_10 = arith.constant dense<0.000000e+00> : vector<8x256xf32>
    %20 = tpu.matmul %18, %19, %cst_10 {dimension_numbers = #tpu.dot_dimension_numbers<[1], [0], [0], [1], [0, 0, 1, 1], [], []>} : vector<8x8xbf16>, vector<8x256xbf16>, vector<8x256xf32> -> vector<8x256xf32>
    %cst_11 = arith.constant dense<0xFF800000> : vector<256xf32>
    %21 = vector.multi_reduction <maximumf>, %20, %cst_11 [0] : vector<8x256xf32> to vector<256xf32>
    %22 = vector.shape_cast %21 : vector<256xf32> to vector<1x256xf32>
    %23 = vector.broadcast %22 : vector<1x256xf32> to vector<8x256xf32>
    %24 = arith.subf %20, %23 : vector<8x256xf32>
    %25 = math.exp %24 : vector<8x256xf32>
    %cst_12 = arith.constant dense<0.000000e+00> : vector<256xf32>
    %26 = vector.multi_reduction <add>, %25, %cst_12 [0] : vector<8x256xf32> to vector<256xf32>
    %27 = vector.shape_cast %26 : vector<256xf32> to vector<1x256xf32>
    %28 = tpu.reciprocal %27 {approx = true} : vector<1x256xf32> -> vector<1x256xf32>
    %29 = vector.broadcast %28 : vector<1x256xf32> to vector<8x256xf32>
    %30 = arith.mulf %25, %29 : vector<8x256xf32>
    %cst_13 = arith.constant 0.000000e+00 : f32
    %31 = vector.broadcast %cst_13 : f32 to vector<8x256xf32>
    %32 = arith.cmpf one, %20, %31 : vector<8x256xf32>
    %cst_14 = arith.constant 0.000000e+00 : f32
    %33 = vector.broadcast %cst_14 : f32 to vector<8x256xf32>
    %34 = arith.select %32, %30, %33 : vector<8x256xi1>, vector<8x256xf32>
    %c0_15 = arith.constant 0 : index
    %c0_16 = arith.constant 0 : index
    %c0_17 = arith.constant 0 : index
    %35 = vector.load %arg5[%c0_15, %c0_16, %c0_17] : memref<1x8x8xbf16, #tpu.memory_space<vmem>>, vector<1x8x8xbf16>
    %36 = vector.shape_cast %35 : vector<1x8x8xbf16> to vector<8x8xbf16>
    %37 = arith.truncf %34 : vector<8x256xf32> to vector<8x256xbf16>
    %cst_18 = arith.constant dense<0.000000e+00> : vector<8x256xf32>
    %38 = tpu.matmul %36, %37, %cst_18 {dimension_numbers = #tpu.dot_dimension_numbers<[1], [0], [0], [1], [0, 0, 1, 1], [], []>} : vector<8x8xbf16>, vector<8x256xbf16>, vector<8x256xf32> -> vector<8x256xf32>
    %39 = arith.index_cast %arg1 : i32 to index
    %c0_19 = arith.constant 0 : index
    %c0_20 = arith.constant 0 : index
    %40 = vector.load %arg2[%39, %c0_19, %c0_20] : memref<2x8x256xbf16, #tpu.memory_space<vmem>>, vector<1x8x256xbf16>
    %41 = vector.shape_cast %40 : vector<1x8x256xbf16> to vector<8x256xbf16>
    %42 = arith.extf %41 : vector<8x256xbf16> to vector<8x256xf32>
    %43 = arith.addf %38, %42 : vector<8x256xf32>
    %44 = arith.truncf %43 : vector<8x256xf32> to vector<8x256xbf16>
    %c0_21 = arith.constant 0 : index
    %c0_22 = arith.constant 0 : index
    %c0_23 = arith.constant 0 : index
    %45 = vector.load %arg6[%c0_21, %c0_22, %c0_23] : memref<1x8x256xbf16, #tpu.memory_space<vmem>>, vector<1x8x256xbf16>
    %46 = vector.shape_cast %45 : vector<1x8x256xbf16> to vector<8x256xbf16>
    %47 = vector.shape_cast %44 : vector<8x256xbf16> to vector<1x8x256xbf16>
    tpu.vector_store %arg6[%c0_21, %c0_22, %c0_23], %47 {strides = array<i32>} : memref<1x8x256xbf16, #tpu.memory_space<vmem>>, vector<1x8x256xbf16>,
    return
  }
  func.func @transform_0(%arg0: i32, %arg1: i32) -> (i32, i32, i32) {
    %c0_i32 = arith.constant 0 : i32
    %c0_i32_0 = arith.constant 0 : i32
    %c0_i32_1 = arith.constant 0 : i32
    return %c0_i32, %c0_i32_0, %arg0 : i32, i32, i32
  }
  func.func @transform_1(%arg0: i32, %arg1: i32) -> (i32, i32, i32) {
    %c0_i32 = arith.constant 0 : i32
    %c0_i32_0 = arith.constant 0 : i32
    return %arg1, %c0_i32, %arg0 : i32, i32, i32
  }
  func.func @transform_2(%arg0: i32, %arg1: i32) -> (i32, i32, i32) {
    %c0_i32 = arith.constant 0 : i32
    %c0_i32_0 = arith.constant 0 : i32
    %c0_i32_1 = arith.constant 0 : i32
    return %arg1, %c0_i32, %c0_i32_0 : i32, i32, i32
  }
  func.func @transform_3(%arg0: i32, %arg1: i32) -> (i32, i32, i32) {
    %c0_i32 = arith.constant 0 : i32
    %c0_i32_0 = arith.constant 0 : i32
    %c0_i32_1 = arith.constant 0 : i32
    return %arg1, %c0_i32, %c0_i32_0 : i32, i32, i32
  }
  func.func @transform_4(%arg0: i32, %arg1: i32) -> (i32, i32, i32) {
    %c0_i32 = arith.constant 0 : i32
    %c0_i32_0 = arith.constant 0 : i32
    return %arg1, %c0_i32, %arg0 : i32, i32, i32
  }
}

</mosaic_0001>

<bundles_post_ra>
// kernel: tpu_custom_call.1
= control target key start
LH: loop header
LB: loop body
LE: loop exit
PB: predicated region body
PF: predicated region fallthrough
CT: control target
= control target key end

     0   :  { %s1383_s0 = inlined_call_operand.hbm [shape: bf16[2,8,256], index: 0, kind: input, shape index: {}]   ;;  %s1384_s1 = inlined_call_operand.hbm [shape: f32[2,2,256], index: 1, kind: input, shape index: {}]   ;;  %s1385_s2 = inlined_call_operand.hbm [shape: bf16[2,8,8], index: 2, kind: input, shape index: {}]   ;;  %s1386_s3 = inlined_call_operand.hbm [shape: bf16[2,8,8], index: 3, kind: input, shape index: {}]   ;;  %s1387_s4 = inlined_call_operand.hbm [shape: bf16[2,8,256], index: 4, kind: output, shape index: {}]  }
   0x1   :  { %1403 = sst [smem:[#allocation20_spill]] %s1384_s1 }
   0x2   :  { %9 = vsyncpa [#allocation3], 0 }
   0x3   :  { %10 = vsyncpa [#allocation6], 0 }
   0x4   :  { %12 = vsyncpa [#allocation6 + $0x1], 0 }
   0x5   :  { %13 = vsyncpa [#allocation9], 0 }
   0x6   :  { %15 = vsyncpa [#allocation9 + $0x1], 0 }
   0x7   :  { %16 = vsyncpa [#allocation4], 0 }
   0x8   :  { %18 = vsyncpa [#allocation4 + $0x1], 0  ;;  %s1075_s15 = smov 0   ;;  %s1077_s16 = smov 0  }
   0x9   :  { %s1079_s17 = smov 0   ;;  %s1081_s18 = smov 0  }
   0xa   :  { %s1083_s19 = smov 0   ;;  %s1085_s20 = smov 0  }
   0xb LB: > { %1404 = sst [smem:[#allocation15_spill]] %s1036_s19  ;;  %s33_s21 = sadd.s32 1, %s1036_s19  ;;  %s1040_s20 = sphi %s1085_s20, %s24_s20   ;;  %s1036_s19 = sphi %s1083_s19, %s1433_s19   ;;  %s1032_s18 = sphi %s1081_s18, %s1432_s18   ;;  %s1028_s17 = sphi %s1079_s17, %s1436_s17   ;;  %s1024_s16 = sphi %s1077_s16, %s1435_s16   ;;  %s1020_s15 = sphi %s1075_s15, %s1434_s15  }
   0xc   : > { %1405 = sst [smem:[#allocation16_spill]] %s1040_s20  ;;  %s71_s22 = sadd.s32 1, %s1028_s17 }
   0xd   : > { %p34_p0 = scmp.ge.s32.totalorder %s33_s21, 2  ;;  %p1388_p1 = scmp.ne.s32.totalorder %s1028_s17, %s1024_s16 }
   0xe   : > { %p79_p2 = scmp.eq.s32.totalorder %s1040_s20, 0  ;;  %p769_p5 = scmp.lt.s32.totalorder %s1040_s20, 2 }
   0xf   : > { %s1438_s21 = smov (%p34_p0, %s33_s21), 0  ;;  %s204_s24 = sand.u32 1, %s1040_s20  }
  0x10   : > { %1406 = sst [smem:[#allocation17_spill]] %s1438_s21  ;;  %p80_p4 = por %p79_p2, %p1388_p1 }
  0x11   : > { %s66_s23 = ssub.s32 %s1036_s19, %s1438_s21  ;;  %s1389_s25 = sand.u32 1, %s1028_s17  }
  0x12   : > { %p69_p6 = scmp.eq.s32.totalorder %s66_s23, 0  ;;  %s1122_s26 = sshll.u32 %s1036_s19, 6 }
  0x13   : > { %s1129_s28 = sshll.u32 %s1389_s25, 2  ;;  %s1408_s1 = sld [smem:[#allocation20_spill]] }
  0x14   : > { %s1125_s27 = scalar_select %p69_p6, %s1028_s17, %s71_s22  }
  0x15   : > { %p1137_p7 = pnand %p769_p5, %p80_p4  ;;  %s208_s7 = scalar_lea.vmem [#allocation5], %s1129_s28 }
  0x16   : > { %1407 = sst [smem:[#allocation18_spill]] %s1125_s27  ;;  %s218_s8 = sshll.u32 %s208_s7, 4  ;;  %s1142_s8 = int_to_ptr.vmem [resolvable:$true] %s218_s8 }
  0x17   : > { %s1409_s6 = scalar_select %p1137_p7, 1, 0 }
  0x18   : > { %s1144_s9 = scalar_lea.sflag [#allocation6], %s204_s24  ;;  %p1150_p9 = pneg %p1137_p7 }
  0x19   : > { %s1135_s5 = scalar_lea.hbm %s1408_s1, %s1122_s26  ;;  %s837_s14 = scalar_lea.hbm %s1408_s1, 128 }
  0x1a   : > { %s832_s10 = scalar_lea.hbm %s1135_s5, 64  ;;  %p838_p12 = scmp.lt.u32.totalorder %s1135_s5, %s1408_s1 }
  0x1b   : > { %p833_p8 = scmp.ne.s32.totalorder %s1135_s5, %s832_s10  ;;  %p839_p13 = scmp.lt.u32.totalorder %s837_s14, %s832_s10 }
  0x1c   : > { %s1410_s11 = scalar_select %p1150_p9, 1, 0 }
  0x1d   : > { %p835_p10 = pnand %p1150_p9, %p833_p8  ;;  %p840_p0 = por %p839_p13, %p838_p12 }
  0x1e   : > { %p841_p2 = scmp.lt.u32.totalorder %s832_s10, %s1135_s5 }
  0x1f   : > { %p836_p11 = pneg %p835_p10 }
  0x20   : > { %p842_p4 = por %p841_p2, %p840_p0 }
  0x22   : > { %p843_p5 = pnand %p842_p4, %p836_p11 }
  0x24   : > { %846 = shalt.err (!%p843_p5)
}
  0x25   : > { %s847_s24 = scalar_lea.vmem %s1142_s8, 64  ;;  %s1042_s29 = smov [#allocation5]  }
  0x26   : > { %p848_p6 = scmp.ne.s32.totalorder %s1142_s8, %s847_s24  ;;  %s852_s30 = sshll.u32 %s1042_s29, 4  ;;  %s853_s30 = int_to_ptr.vmem [resolvable:$false] %s852_s30 }
  0x27   : > { %s854_s7 = scalar_lea.vmem %s853_s30, 128  ;;  %p855_p3 = scmp.lt.s32.totalorder %s1142_s8, %s853_s30 }
  0x28   : > { %p850_p8 = pnand %p848_p6, %p1150_p9  ;;  %p856_p1 = scmp.lt.s32.totalorder %s854_s7, %s847_s24 }
  0x2a   : > { %p851_p10 = pneg %p850_p8  ;;  %p857_p12 = por %p856_p1, %p855_p3 }
  0x2c   : > { %p858_p13 = pnand %p857_p12, %p851_p10 }
  0x2e   : > { %861 = shalt.err (!%p858_p13)
}
  0x2f   : > { %757 = dma.hbm_to_vmem [thread:$0]  (!%p1137_p7), %s1135_s5, 64, %s1142_s8, %s1144_s9  }
  0x30   : > { %s1175_s10 = sadd.s32 4294967295, %s1040_s20   ;;  %s705_s12 = sadd.s32 4294967294, %s1040_s20  }
  0x31   : > { %p84_p1 = scmp.ne.s32.totalorder %s1024_s16, %s1020_s15  ;;  %p1392_p3 = scmp.eq.s32.totalorder %s1175_s10, 0 }
  0x32   : > { %p162_p11 = scmp.eq.s32.totalorder %s1175_s10, 1  ;;  %p168_p0 = scmp.eq.s32.totalorder %s705_s12, 1 }
  0x33   : > { %p706_p2 = scmp.ge.s32.totalorder %s1040_s20, 1  ;;  %p1185_p4 = por %p1392_p3, %p84_p1 }
  0x34   : > { %p1412_p5 = scmp.ne.s32.totalorder %s1028_s17, %s1024_s16  ;;  %p1196_p8 = por %p168_p0, %p84_p1 }
  0x35   : > { %s1411_s13 = scalar_select %p1185_p4, 1, 0 }
  0x36   : > { %p1192_p6 = por %p162_p11, %p1412_p5  ;;  %p175_p10 = scmp.lt.s32.totalorder %s1040_s20, 3 }
  0x37   : > { %s1414_s8 = scalar_select %p1196_p8, 1, 0 }
  0x38   : > { %s1413_s5 = scalar_select %p1192_p6, 1, 0 }
  0x39   : > { %1415 = sst [smem:[#allocation19_spill]] %s1414_s8  ;;  %p1201_p12 = pnand %p706_p2, %p175_p10 }
  0x3a   : > { %s1043_s22 = smov [#allocation2]   ;;  %s1213_s30 = scalar_lea.hbm %s1385_s2, %s1122_s26 }
  0x3b   : > { %s1416_s14 = scalar_select %p1201_p12, 1, 0 }
  0x3c   : > { %s190_s23 = sshll.u32 %s1043_s22, 4  ;;  %p750_p13 = pneg %p1201_p12  ;;  %s1205_s23 = int_to_ptr.vmem [resolvable:$true] %s190_s23 }
  0x3d   : > { %s229_s12 = scalar_lea.vmem [#allocation7], %s1129_s28  ;;  %s862_s21 = scalar_lea.hbm %s1383_s0, 256 }
  0x3e   : > { %p1217_p1 = pnand %p750_p13, %p1392_p3  ;;  %s236_s25 = sshll.u32 %s229_s12, 4  ;;  %s1222_s25 = int_to_ptr.vmem [resolvable:$true] %s236_s25 }
  0x3f   : > { %p863_p11 = scmp.ne.s32.totalorder %s1383_s0, %s862_s21  ;;  %p869_p10 = scmp.lt.u32.totalorder %s862_s21, %s1383_s0 }
  0x40   : > { %p864_p0 = pneg %p1217_p1 }
  0x42   : > { %p865_p2 = pnand %p864_p0, %p863_p11 }
  0x44   : > { %p866_p5 = pneg %p865_p2 }
  0x46   : > { %p871_p13 = pnand %p869_p10, %p866_p5 }
  0x48   : > { %874 = shalt.err (!%p871_p13)
}
  0x49   : > { %s875_s12 = scalar_lea.vmem %s1205_s23, 256  ;;  %p883_p4 = scmp.lt.s32.totalorder %s1205_s23, %s1205_s23 }
  0x4a   : > { %p876_p3 = scmp.ne.s32.totalorder %s1205_s23, %s875_s12  ;;  %p884_p12 = scmp.lt.s32.totalorder %s875_s12, %s875_s12 }
  0x4c   : > { %p878_p8 = pnand %p876_p3, %p864_p0  ;;  %p885_p7 = por %p884_p12, %p883_p4 }
  0x4e   : > { %p879_p6 = pneg %p878_p8 }
  0x50   : > { %p886_p9 = pnand %p885_p7, %p879_p6 }
  0x52   : > { %889 = shalt.err (!%p886_p9)
}
  0x53   : > { %s1044_s1 = smov 128   ;;  %s1045_s19 = smov 8  }
  0x54   : > { %753 = dma.hbm_to_vmem [thread:$0]  (!%p1217_p1), %s1383_s0, 256, %s1205_s23, [#allocation3], %s1044_s1, %s1044_s1, %s1045_s19  }
  0x55   : > { %s890_s22 = scalar_lea.hbm %s1213_s30, 64  ;;  %p1418_p8 = scmp.ne.s32.totalorder %s1410_s11, 0 }
  0x56   : > { %p891_p3 = scmp.ne.s32.totalorder %s1213_s30, %s890_s22  ;;  %s895_s12 = scalar_lea.hbm %s1385_s2, 128 }
  0x57   : > { %p896_p9 = scmp.lt.u32.totalorder %s1213_s30, %s1385_s2  ;;  %p897_p6 = scmp.lt.u32.totalorder %s895_s12, %s890_s22 }
  0x58   : > { %p893_p4 = pnand %p891_p3, %p1418_p8  ;;  %p899_p11 = scmp.lt.u32.totalorder %s890_s22, %s1213_s30 }
  0x59   : > { %p898_p12 = por %p897_p6, %p896_p9 }
  0x5a   : > { %p894_p7 = pneg %p893_p4 }
  0x5b   : > { %p900_p0 = por %p899_p11, %p898_p12 }
  0x5d   : > { %p901_p2 = pnand %p900_p0, %p894_p7 }
  0x5f   : > { %904 = shalt.err (!%p901_p2)
}
  0x60   : > { %s905_s23 = scalar_lea.vmem %s1222_s25, 64  ;;  %s1046_s7 = smov [#allocation7]  }
  0x61   : > { %p906_p1 = scmp.ne.s32.totalorder %s1222_s25, %s905_s23  ;;  %s910_s1 = sshll.u32 %s1046_s7, 4  ;;  %s911_s1 = int_to_ptr.vmem [resolvable:$false] %s910_s1 }
  0x62   : > { %s912_s20 = scalar_lea.vmem %s911_s1, 128  ;;  %p913_p13 = scmp.lt.s32.totalorder %s1222_s25, %s911_s1 }
  0x63   : > { %p908_p5 = pnand %p906_p1, %p1418_p8  ;;  %p914_p3 = scmp.lt.s32.totalorder %s912_s20, %s905_s23 }
  0x65   : > { %p909_p10 = pneg %p908_p5  ;;  %p915_p4 = por %p914_p3, %p913_p13 }
  0x67   : > { %p916_p9 = pnand %p915_p4, %p909_p10 }
  0x69   : > { %919 = shalt.err (!%p916_p9)
}
  0x6a   : > { %p1419_p7 = scmp.ne.s32.totalorder %s1409_s6, 0  ;;  %s1271_s21 = scalar_lea.hbm %s1386_s3, %s1122_s26 }
  0x6b   : > { %s247_s27 = scalar_lea.vmem [#allocation8], %s1129_s28  ;;  %s1420_s24 = sand.u32 1, %s1028_s17  }
  0x6c   : > { %760 = dma.hbm_to_vmem [thread:$0]  (!%p1419_p7), %s1213_s30, 64, %s1222_s25, %s1144_s9  }
  0x6d   : > { %s254_s22 = sshll.u32 %s247_s27, 4  ;;  %s244_s29 = scalar_lea.sflag [#allocation9], %s1420_s24  ;;  %s255_s22 = int_to_ptr.vmem [resolvable:$true] %s254_s22 }
  0x6e   : > { %s920_s12 = scalar_lea.hbm %s1271_s21, 64  ;;  %s925_s30 = scalar_lea.hbm %s1386_s3, 128 }
  0x6f   : > { %p921_p6 = scmp.ne.s32.totalorder %s1271_s21, %s920_s12  ;;  %p926_p0 = scmp.lt.u32.totalorder %s1271_s21, %s1386_s3 }
  0x70   : > { %p927_p2 = scmp.lt.u32.totalorder %s925_s30, %s920_s12  ;;  %p929_p5 = scmp.lt.u32.totalorder %s920_s12, %s1271_s21 }
  0x71   : > { %p923_p12 = pnand %p921_p6, %p1418_p8 }
  0x72   : > { %p928_p1 = por %p927_p2, %p926_p0 }
  0x73   : > { %p924_p11 = pneg %p923_p12 }
  0x74   : > { %p930_p10 = por %p929_p5, %p928_p1 }
  0x76   : > { %p931_p13 = pnand %p930_p10, %p924_p11 }
  0x78   : > { %934 = shalt.err (!%p931_p13)
}
  0x79   : > { %s935_s28 = scalar_lea.vmem %s255_s22, 64  ;;  %s1047_s7 = smov [#allocation8]  }
  0x7a   : > { %p936_p3 = scmp.ne.s32.totalorder %s255_s22, %s935_s28  ;;  %s940_s1 = sshll.u32 %s1047_s7, 4  ;;  %s941_s1 = int_to_ptr.vmem [resolvable:$false] %s940_s1 }
  0x7b   : > { %s942_s20 = scalar_lea.vmem %s941_s1, 128  ;;  %p943_p6 = scmp.lt.s32.totalorder %s255_s22, %s941_s1 }
  0x7c   : > { %p938_p4 = pnand %p936_p3, %p1418_p8  ;;  %p944_p12 = scmp.lt.s32.totalorder %s942_s20, %s935_s28 }
  0x7e   : > { %p939_p9 = pneg %p938_p4  ;;  %p945_p7 = por %p944_p12, %p943_p6 }
  0x80   : > { %p946_p0 = pnand %p945_p7, %p939_p9 }
  0x82   : > { %949 = shalt.err (!%p946_p0)
}
  0x83   : > { %p1421_p2 = scmp.ne.s32.totalorder %s1409_s6, 0  ;;  %p1422_p11 = scmp.ne.s32.totalorder %s1416_s14, 0 }
  0x84   : > { %p1423_p1 = scmp.eq.s32.totalorder (!%p1422_p11), %s1175_s10, 0 }
  0x85   : > { %763 = dma.hbm_to_vmem [thread:$0]  (!%p1421_p2), %s1271_s21, 64, %s255_s22, %s244_s29  }
  0x86   : > { %263 = sbr.rel (%p1422_p11) target bundleno = 673 (0x2a1), region = 36 }
  0x8d   : > { %1003 = dma.done.wait (%p1423_p1), [#allocation3], 256   ;;  %p1424_p8 = pmov %p1423_p1 }
  0x8e   : > { %s269_s11 = sand.u32 1, %s1175_s10   ;;  %s1301_s8 = sand.u32 1, %s1024_s16  }
  0x8f   : > { %1005 = vsyncadd (%p1424_p8), [#allocation3], 4294967040  ;;  %s1304_s19 = sshll.u32 %s1301_s8, 2  ;;  %s270_s6 = scalar_lea.sflag [#allocation6], %s269_s11 }
  0x90   : > { %s273_s21 = scalar_lea.vmem [#allocation5], %s1304_s19  ;;  %p1425_p7 = scmp.ne.s32.totalorder %s1411_s13, 0 }
  0x92   : > { %1007 = dma.done.wait (%p1425_p7), %s270_s6, 128  }
  0x93   : > { %1009 = vsyncadd (%p1425_p7), %s270_s6, 4294967168  ;;  %s282_s14 = scalar_lea.vmem [#allocation7], %s1304_s19  ;;  %s288_s27 = scalar_lea.sflag [#allocation9], %s1301_s8 }
  0x94   : > { %s291_s10 = scalar_lea.vmem [#allocation8], %s1304_s19 }
  0x95   : > { %1011 = dma.done.wait (%p1425_p7), %s288_s27, 64  }
  0x96   : > { %1013 = vsyncadd (%p1425_p7), %s288_s27, 4294967232  ;;  %v335_v0 = vlaneseq  ;;  %v1048_v1 = vmov 0   ;;  %v330_v7 = vld [vmem:[%s273_s21] sm:$0xf]  ;;  %v331_v8 = vld [vmem:[#allocation2] sm:$0xff]  ;;  %vm390_vm0 = vcmask 1043456  }
  0x97   : > { %429 = vmatprep.mubr.bf16.mxu0 %v1048_v1  ;;  %526 = vmatprep.mubr.bf16.mxu1 %v1048_v1  ;;  %v358_v9 = vld [vmem:[#allocation2 + $0x8] sm:$0xff]  ;;  %v333_v10 = vunpack.c.h.bf16 %v331_v8  ;;  %v332_v14 = vunpack.c.l.bf16 %v331_v8  ;;  %v383_v31 = vld [vmem:[%s282_s14] sm:$0xf]  ;;  %vm386_vm1 = vcmask 64512   ;;  %s735_s13 = sshll.u32 %s1032_s18, 3  ;;  %s721_s24 = sshll.u32 %s1301_s8, 3 }
  0x98   : > { %v336_v2 = vshrl.u32 %v335_v0, 7  ;;  %v360_v12 = vunpack.c.h.bf16 %v358_v9  ;;  %v359_v16 = vunpack.c.l.bf16 %v358_v9  ;;  %s481_s22 = scalar_lea.vmem [#allocation2], %s735_s13  ;;  %s737_s29 = sshll.u32 %s1032_s18, 7 }
  0x99   : > { %s325_s12 = scalar_lea.vmem [#allocation10], %s721_s24  ;;  %s1334_s26 = scalar_lea.hbm %s1387_s4, %s737_s29 }
  0x9a   : > { %v341_v3 = vsub.s32 2, %v336_v2  ;;  %v367_v4 = vsub.s32 3, %v336_v2  ;;  %v337_v5 = vsub.s32 0, %v336_v2  ;;  %v363_v6 = vsub.s32 1, %v336_v2  ;;  %s561_s25 = sshll.u32 %s325_s12, 4  ;;  %s545_s23 = scalar_lea.sflag [#allocation4], %s1301_s8  ;;  %s1336_s25 = int_to_ptr.vmem [resolvable:$true] %s561_s25 }
  0x9b   : > { %s950_s28 = scalar_lea.vmem %s1336_s25, 128  ;;  %p1426_p10 = scmp.ne.s32.totalorder %s1413_s5, 0 }
  0x9c   : > { %v342_v11 = vrot.slane %v330_v7, %v341_v3  ;;  %v368_v13 = vrot.slane %v330_v7, %v367_v4  ;;  %v338_v15 = vrot.slane %v330_v7, %v337_v5  ;;  %v364_v17 = vrot.slane %v330_v7, %v363_v6  ;;  %p951_p5 = scmp.ne.s32.totalorder %s1336_s25, %s950_s28  ;;  %s1049_s18 = smov [#allocation10]  }
  0x9d   : > { %s954_s7 = sshll.u32 %s1049_s18, 4  ;;  %s955_s7 = int_to_ptr.vmem [resolvable:$false] %s954_s7 }
  0x9e   : > { %v352_v18 = vrot.slane %v342_v11, %v337_v5  ;;  %v378_v19 = vrot.slane %v368_v13, %v363_v6  ;;  %v348_v20 = vrot.slane %v338_v15, %v337_v5  ;;  %v374_v21 = vrot.slane %v364_v17, %v363_v6  ;;  %v476_v11 = vld [vmem:[%s291_s10] sm:$0xf]  ;;  %p952_p13 = pnand %p951_p5, %p1426_p10  ;;  %s956_s1 = scalar_lea.vmem %s955_s7, 256 }
  0x9f   : > { %p957_p4 = scmp.lt.s32.totalorder %s1336_s25, %s955_s7  ;;  %p958_p9 = scmp.lt.s32.totalorder %s956_s1, %s950_s28 }
  0xa0   : > { %v354_v22 = vmul.f32 %v352_v18, %v333_v10  ;;  %v380_v23 = vmul.f32 %v378_v19, %v360_v12  ;;  %v353_v24 = vmul.f32 %v348_v20, %v332_v14  ;;  %v379_v25 = vmul.f32 %v374_v21, %v359_v16  ;;  %v482_v12 = vld [vmem:[%s481_s22] sm:$0xff]  ;;  %p953_p3 = pneg %p952_p13 }
  0xa1   : > { %v483_v13 = vunpack.c.l.bf16 %v482_v12  ;;  %v484_v14 = vunpack.c.h.bf16 %v482_v12  ;;  %p959_p6 = por %p958_p9, %p957_p4 }
  0xa2   : > { %v382_v26 = vadd.f32 %v380_v23, %v354_v22  ;;  %v381_v27 = vadd.f32 %v379_v25, %v353_v24 }
  0xa3   : > { %p960_p12 = pnand %p959_p6, %p953_p3 }
  0xa4   : > { %v385_v28 = vpack.c.bf16 %v382_v26, %v382_v26  ;;  %v384_v29 = vpack.c.bf16 %v381_v27, %v381_v27 }
  0xa6   : > { %722 = vmatprep.subr.msk.bf16.mxu0 %vm390_vm0, %v385_v28  ;;  %v392_v30 = vsel %vm390_vm0, %v384_v29, 0 }
  0xa7   : > { %398 = vmatpush1.bf16.msra.mxu0 %v392_v30 }
  0xaa   : > { %723 = vmatmul.mubr.msk.bf16.vlgmr.msra.gmra.mrb[0].mxu0 %vm386_vm1, %v383_v31 }
 0x17d   : > { %v431_v32 = vpop.f32.mrb[0].mxu0 }
 0x17e   : > { %v438_v33 = vrot.slane %v431_v32, 4  ;;  %v433_v34 = vpop.f32.mrb[1].mxu0  ;;  %vm472_vm2 = vcmp.ne.f32.partialorder %v431_v32, 0.0 }
 0x17f   : > { %v444_v35 = vrot.slane %v433_v34, 4  ;;  %v435_v36 = vpop.f32.mrb[2].mxu0  ;;  %vm473_vm3 = vcmp.ne.f32.partialorder %v433_v34, 0.0 }
 0x180   : > { %v439_v37 = vmax.f32 %v431_v32, %v438_v33  ;;  %v436_v38 = vpop.f32.mrb[3].mxu0 }
 0x181   : > { %v445_v39 = vmax.f32 %v433_v34, %v444_v35 }
 0x182   : > { %v440_v40 = vrot.slane %v439_v37, 2 }
 0x183   : > { %v446_v41 = vrot.slane %v445_v39, 2 }
 0x184   : > { %v441_v42 = vmax.f32 %v439_v37, %v440_v40 }
 0x185   : > { %v447_v43 = vmax.f32 %v445_v39, %v446_v41 }
 0x186   : > { %v442_v44 = vrot.slane %v441_v42, 1 }
 0x187   : > { %v448_v45 = vrot.slane %v447_v43, 1 }
 0x188   : > { %v443_v46 = vmax.f32 %v441_v42, %v442_v44 }
 0x189   : > { %v449_v47 = vmax.f32 %v447_v43, %v448_v45 }
 0x18a   : > { %v450_v48 = vsub.f32 %v431_v32, %v443_v46 }
 0x18b   : > { %v451_v49 = vsub.f32 %v433_v34, %v449_v47 }
 0x18c   : > { %v452_v50 = vmul.f32 1.442695, %v450_v48 }
 0x18d   : > { %v454_v51 = vmul.f32 1.442695, %v451_v49 }
 0x18e   : > { %824 = vpow2.f32 %v452_v50 }
 0x18f   : > { %826 = vpow2.f32 %v454_v51 }
 0x198   : > { %v825_v52 = vpop.eup %824 }
 0x199   : > { %v827_v53 = vpop.eup %826  ;;  %v456_v54 = vrot.slane %v825_v52, 4 }
 0x19a   : > { %v462_v55 = vrot.slane %v827_v53, 4 }
 0x19b   : > { %v457_v56 = vadd.f32 %v825_v52, %v456_v54 }
 0x19c   : > { %v463_v57 = vadd.f32 %v827_v53, %v462_v55 }
 0x19d   : > { %v458_v58 = vrot.slane %v457_v56, 2 }
 0x19e   : > { %v464_v59 = vrot.slane %v463_v57, 2 }
 0x19f   : > { %v459_v60 = vadd.f32 %v458_v58, %v457_v56 }
 0x1a0   : > { %v465_v61 = vadd.f32 %v464_v59, %v463_v57 }
 0x1a1   : > { %v460_v62 = vrot.slane %v459_v60, 1 }
 0x1a2   : > { %v466_v63 = vrot.slane %v465_v61, 1 }
 0x1a3   : > { %v461_v0 = vadd.f32 %v460_v62, %v459_v60 }
 0x1a4   : > { %v467_v1 = vadd.f32 %v466_v63, %v465_v61 }
 0x1a5   : > { %828 = vrcp.f32 %v461_v0 }
 0x1a6   : > { %830 = vrcp.f32 %v467_v1 }
 0x1af   : > { %v829_v2 = vpop.eup %828 }
 0x1b0   : > { %v831_v3 = vpop.eup %830  ;;  %v470_v4 = vmul.f32 %v829_v2, %v825_v52 }
 0x1b1   : > { %v471_v5 = vmul.f32 %v831_v3, %v827_v53 }
 0x1b2   : > { %v474_v6 = vsel %vm472_vm2, %v470_v4, 0.0 }
 0x1b3   : > { %v475_v7 = vsel %vm473_vm3, %v471_v5, 0.0  ;;  %v477_v8 = vpack.c.bf16 %v474_v6, %v474_v6 }
 0x1b4   : > { %v478_v9 = vpack.c.bf16 %v475_v7, %v475_v7 }
 0x1b5   : > { %v489_v10 = vsel %vm390_vm0, %v477_v8, 0 }
 0x1b6   : > { %726 = vmatprep.subr.msk.bf16.mxu1 %vm390_vm0, %v478_v9 }
 0x1b7   : > { %495 = vmatpush1.bf16.msra.mxu1 %v489_v10 }
 0x1ba   : > { %727 = vmatmul.mubr.msk.bf16.vlgmr.msra.gmra.mrb[0].mxu1 %vm386_vm1, %v476_v11 }
 0x28d   : > { %v528_v15 = vpop.f32.mrb[0].mxu1 }
 0x28e   : > { %v529_v16 = vadd.f32 %v528_v15, %v483_v13  ;;  %v530_v17 = vpop.f32.mrb[1].mxu1 }
 0x28f   : > { %v531_v18 = vadd.f32 %v530_v17, %v484_v14  ;;  %v532_v19 = vpop.f32.mrb[2].mxu1 }
 0x290   : > { %v533_v20 = vpop.f32.mrb[3].mxu1 }
 0x291   : > { %v736_v21 = vpack.c.bf16 %v531_v18, %v529_v16 }
 0x293   : > { %543 = vst [vmem:[%s325_s12] sm:$0xff] %v736_v21 }
 0x294   : > { %963 = shalt.err (!%p960_p12)
}
 0x295   : > { %s964_s20 = scalar_lea.hbm %s1334_s26, 128  ;;  %s968_s19 = scalar_lea.hbm %s1387_s4, 256 }
 0x296   : > { %p965_p0 = scmp.ne.s32.totalorder %s1334_s26, %s964_s20  ;;  %p969_p1 = scmp.lt.u32.totalorder %s1334_s26, %s1387_s4 }
 0x297   : > { %p970_p8 = scmp.lt.u32.totalorder %s968_s19, %s964_s20  ;;  %p972_p5 = scmp.lt.u32.totalorder %s964_s20, %s1334_s26 }
 0x298   : > { %p966_p2 = pnand %p965_p0, %p1426_p10 }
 0x299   : > { %p971_p7 = por %p970_p8, %p969_p1 }
 0x29a   : > { %p967_p11 = pneg %p966_p2 }
 0x29b   : > { %p973_p13 = por %p972_p5, %p971_p7 }
 0x29d   : > { %p974_p3 = pnand %p973_p13, %p967_p11 }
 0x29f   : > { %977 = shalt.err (!%p974_p3)
}
 0x2a0   : > { %748 = dma.vmem_to_hbm [thread:$0]  (%p1426_p10), %s1336_s25, 128, %s1334_s26, %s545_s23  }
 0x2a1 PF: > { %s1427_s14 = sld [smem:[#allocation19_spill]]  ;;  %s1428_s27 = sld [smem:[#allocation16_spill]] }
 0x2a2   : > { %s573_s10 = sand.u32 1, %s1020_s15  }
 0x2a3   : > { %s574_s13 = scalar_lea.sflag [#allocation4], %s573_s10 }
 0x2a7   : > { %p1429_p4 = scmp.ne.s32.totalorder %s1427_s14, 0  ;;  %p1430_p9 = scmp.ge.s32.totalorder %s1428_s27, 2 }
 0x2a9   : > { %p765_p6 = pnand %p1430_p9, %p1429_p4 }
 0x2ab   : > { %1015 = dma.done.wait (!%p765_p6), %s574_s13, 128  }
 0x2ac   : > { %1017 = vsyncadd (!%p765_p6), %s574_s13, 4294967168  ;;  %s24_s20 = sadd.s32 1, %s1428_s27   ;;  %s1431_s5 = sld [smem:[#allocation18_spill]] }
 0x2ad   : > { %p21_p12 = scmp.ge.s32.totalorder %s24_s20, 4   ;;  %s1432_s18 = sld [smem:[#allocation15_spill]] }
 0x2ae   : > { %s1433_s19 = sld [smem:[#allocation17_spill]]  ;;  %s1434_s15 = smov %s1024_s16 }
 0x2af   : > { %s1435_s16 = smov %s1028_s17  ;;  %23 = sbr.rel (!%p21_p12) target bundleno = 11 (0xb), region = 113 }
 0x2b2   : > { %s1436_s17 = smov %s1431_s5 }
 0x2b6   :  { %579 = vsyncpa [#allocation3], 1 }
 0x2b7   :  { %581 = vsyncpa [#allocation3 + $0x1], 1 }
 0x2b8   :  { %582 = vsyncpa [#allocation6], 1 }
 0x2b9   :  { %584 = vsyncpa [#allocation6 + $0x1], 1 }
 0x2ba   :  { %585 = vsyncpa [#allocation9], 1 }
 0x2bb   :  { %587 = vsyncpa [#allocation9 + $0x1], 1 }
 0x2bc   :  { %588 = vsyncpa [#allocation4], 1 }
 0x2bd   :  { %590 = vsyncpa [#allocation4 + $0x1], 1 }

</bundles_post_ra>
